<compile_context>
chip_gen: v6e
topology: v6e:2x2x1
jax: 0.10.0
libtpu: 0.0.40
codegen_flags: <defaults>
</compile_context>

<pallas_src>
import functools
import math

import jax
import jax.numpy as jnp
from jax.experimental import pallas as pl
from jax.experimental.pallas import tpu as pltpu


def make_pe(d_model: int, max_len: int = 5000) -> jnp.ndarray:
    """Builds the (max_len, 1, d_model) sinusoidal positional-encoding buffer."""
    if d_model % 2 != 0:
        raise ValueError("d_model must be even for sinusoidal positional encoding")
    position = jnp.arange(max_len, dtype=jnp.float32)[:, None]          # (max_len, 1)
    div_term = jnp.exp(
        jnp.arange(0, d_model, 2, dtype=jnp.float32) * (-math.log(10000.0) / d_model)
    )                                                                    # (d_model//2,)
    pe = jnp.zeros((max_len, 1, d_model), dtype=jnp.float32)
    pe = pe.at[:, 0, 0::2].set(jnp.sin(position * div_term))
    pe = pe.at[:, 0, 1::2].set(jnp.cos(position * div_term))
    return pe


# ------------------------------- kernels -------------------------------------


def _pe_add_kernel_3d(x_ref, pe_ref, o_ref):
    # x_ref: (TS, TB, D); pe_ref: (TS, 1, D) f32.  Sublane-broadcast add over the
    # batch tile; the add promotes to f32 and is cast once at the store.
    o_ref[...] = (x_ref[...] + pe_ref[...]).astype(o_ref.dtype)


def _pe_add_kernel_folded(x_ref, pe_ref, o_ref, *, batch: int):
    # x_ref/o_ref: (TS, B*D) lane-dense view; pe_ref: (TS, 1, D) f32.
    # Lane-tile the pe row across the B replicas; this in-kernel replication is
    # free filler under a memory-bound kernel.
    ts = pe_ref.shape[0]
    d = pe_ref.shape[2]
    pe_row = pe_ref[...].reshape(ts, d)                       # (TS, D)
    pe_wide = jnp.concatenate([pe_row] * batch, axis=-1)      # (TS, B*D)
    o_ref[...] = (x_ref[...] + pe_wide).astype(o_ref.dtype)


# ---------------------------- tuning / wrapper --------------------------------


def _tuning_params():
    """(target x-tile bytes, scoped VMEM limit) picked per TPU generation."""
    vmem_cap = 128 * 1024 * 1024
    try:  # trace-time hardware query; fall back to conservative defaults.
        vmem_cap = int(pltpu.get_tpu_info().vmem_capacity_bytes)
    except Exception:
        pass
    if vmem_cap <= 64 * 1024 * 1024:
        # v7x: 3.2 TB/s HBM makes the per-step overhead ~3-4x pricier per byte,
        # so use bigger tiles; only 64 MiB VMEM per TC -> 48 MiB scoped limit.
        return 8 * 1024 * 1024, 48 * 1024 * 1024
    # v5e / v6e (128 MiB physical VMEM): 8 MiB tiles amortize step overhead on
    # v6e and are harmless on v5e; 64 MiB scoped limit leaves ample headroom.
    return 8 * 1024 * 1024, 64 * 1024 * 1024


def positional_encoding_forward(x: jnp.ndarray, pe: jnp.ndarray) -> jnp.ndarray:
    """x: (S, B, D); pe: (max_len, 1, D). Returns x + pe[:S] (broadcast over B)."""
    S, B, D = x.shape
    max_len = pe.shape[0]
    if S > max_len:
        raise ValueError(
            f"sequence length {S} exceeds positional-encoding max_len {max_len}"
        )

    itemsize = jnp.dtype(x.dtype).itemsize
    pe_itemsize = jnp.dtype(pe.dtype).itemsize
    # Native sublane packing of x's dtype: 8 f32, 16 bf16, 32 int8/fp8.
    pack = max(8, 32 // itemsize)

    target_bytes, vmem_limit = _tuning_params()
    vmem_budget = (vmem_limit * 3) // 4  # headroom for compiler scratch

    cost = pl.CostEstimate(
        flops=S * B * D,
        transcendentals=0,
        bytes_accessed=2 * S * B * D * itemsize + S * D * pe_itemsize,
    )

    # ---------- lane-dense small-batch path: fold B into the lane axis ----------
    if B < pack and D % 128 == 0:
        row_bytes = B * D * itemsize            # one row of the (S, B*D) view
        pe_row_bytes = D * pe_itemsize
        per_step_row = 2 * row_bytes + pe_row_bytes
        ts = max(1, min(target_bytes // row_bytes, (vmem_budget // 2) // per_step_row))
        if ts >= S:
            ts = S
        else:
            ts = min(S, max(8, (ts // 8) * 8))  # sublane-aligned block rows

        x2 = x.reshape(S, B * D)                # contiguous view, free
        grid = (pl.cdiv(S, ts),)
        out2 = pl.pallas_call(
            functools.partial(_pe_add_kernel_folded, batch=B),
            out_shape=jax.ShapeDtypeStruct((S, B * D), x.dtype),
            grid_spec=pltpu.PrefetchScalarGridSpec(
                num_scalar_prefetch=0,
                grid=grid,
                in_specs=[
                    pl.BlockSpec((ts, B * D), lambda s: (s, 0)),
                    pl.BlockSpec((ts, 1, D), lambda s: (s, 0, 0)),
                ],
                out_specs=pl.BlockSpec((ts, B * D), lambda s: (s, 0)),
            ),
            compiler_params=pltpu.CompilerParams(
                dimension_semantics=("parallel",),
                vmem_limit_bytes=vmem_limit,
            ),
            cost_estimate=cost,
        )(x2, pe)
        return out2.reshape(S, B, D)

    # ------------------ general 3-D path (B >= pack, any D) ---------------------
    full_bd = B * D * itemsize
    pe_row_bytes = D * pe_itemsize
    if full_bd <= target_bytes:
        tb = B
        per_step_row = 2 * full_bd + pe_row_bytes
        ts = max(1, min(target_bytes // full_bd, (vmem_budget // 2) // per_step_row))
        ts = min(ts, S)
    else:
        # A single (B, D) slab already exceeds the target: one sequence row per
        # step, batch tiled in pack-aligned chunks.
        ts = 1
        tb = (target_bytes // (D * itemsize) // pack) * pack
        tb = max(pack, min(B, tb))
        while tb > pack and 2 * (2 * tb * D * itemsize + pe_row_bytes) > vmem_budget:
            tb -= pack
        tb = min(tb, B)

    grid = (pl.cdiv(S, ts), pl.cdiv(B, tb))  # S outer, B inner -> pe stays resident
    return pl.pallas_call(
        _pe_add_kernel_3d,
        out_shape=jax.ShapeDtypeStruct((S, B, D), x.dtype),
        grid_spec=pltpu.PrefetchScalarGridSpec(
            num_scalar_prefetch=0,
            grid=grid,
            in_specs=[
                pl.BlockSpec((ts, tb, D), lambda s, b: (s, b, 0)),
                # pe block index ignores b -> its DMA is skipped across the inner
                # batch loop (tile resident in VMEM).
                pl.BlockSpec((ts, 1, D), lambda s, b: (s, 0, 0)),
            ],
            out_specs=pl.BlockSpec((ts, tb, D), lambda s, b: (s, b, 0)),
        ),
        compiler_params=pltpu.CompilerParams(
            dimension_semantics=("parallel", "parallel"),
            vmem_limit_bytes=vmem_limit,
        ),
        cost_estimate=cost,
    )(x, pe)


if __name__ == "__main__":
    d_model = 128      # lane-dense (D % 128 == 0)
    max_len = 64       # small synthetic max_len (module default is 5000)
    seq_len = 8
    batch = 2          # < sublane pack -> exercises the folded lane-dense path

    key = jax.random.PRNGKey(0)
    x = jax.random.normal(key, (seq_len, batch, d_model), dtype=jnp.float32)
    pe = make_pe(d_model, max_len)

    out = jax.block_until_ready(positional_encoding_forward(x, pe))

    # Reference check (pure JAX, mirrors the PyTorch forward).
    ref = x + pe[:seq_len]
    assert out.shape == (seq_len, batch, d_model)
    assert jnp.allclose(out, ref, atol=1e-6), "mismatch vs reference"

    print("KERNEL_OK")
</pallas_src>

<mosaic_0001>
module attributes {stable_mosaic.version = 11 : i64} {
  func.func @_pe_add_kernel_folded(%arg0: i32, %arg1: memref<8x256xf32, #tpu.memory_space<vmem>>, %arg2: memref<8x1x128xf32, #tpu.memory_space<vmem>>, %arg3: memref<8x256xf32, #tpu.memory_space<vmem>>) attributes {dimension_semantics = [#tpu.dimension_semantics<parallel>], iteration_bounds = array<i64: 1>, scalar_prefetch = 0 : i64, scratch_operands = 0 : i64, tpu.core_type = #tpu.core_type<tc>, window_params = [{transform_indices = @transform_0, window_bounds = array<i64: 8, 256>}, {transform_indices = @transform_1, window_bounds = array<i64: 8, 1, 128>}, {transform_indices = @transform_2, window_bounds = array<i64: 8, 256>}]} {
    %c0 = arith.constant 0 : index
    %c0_0 = arith.constant 0 : index
    %c0_1 = arith.constant 0 : index
    %0 = vector.load %arg2[%c0, %c0_0, %c0_1] : memref<8x1x128xf32, #tpu.memory_space<vmem>>, vector<8x1x128xf32>
    %1 = vector.shape_cast %0 : vector<8x1x128xf32> to vector<8x128xf32>
    %2 = tpu.concatenate %1, %1 in 1 : vector<8x128xf32>, vector<8x128xf32> -> vector<8x256xf32>
    %c0_2 = arith.constant 0 : index
    %c0_3 = arith.constant 0 : index
    %3 = vector.load %arg1[%c0_2, %c0_3] : memref<8x256xf32, #tpu.memory_space<vmem>>, vector<8x256xf32>
    %4 = arith.addf %3, %2 : vector<8x256xf32>
    %c0_4 = arith.constant 0 : index
    %c0_5 = arith.constant 0 : index
    %5 = vector.load %arg3[%c0_4, %c0_5] : memref<8x256xf32, #tpu.memory_space<vmem>>, vector<8x256xf32>
    tpu.vector_store %arg3[%c0_4, %c0_5], %4 {strides = array<i32>} : memref<8x256xf32, #tpu.memory_space<vmem>>, vector<8x256xf32>,
    return
  }
  func.func @transform_0(%arg0: i32) -> (i32, i32) {
    %c0_i32 = arith.constant 0 : i32
    %c0_i32_0 = arith.constant 0 : i32
    return %arg0, %c0_i32 : i32, i32
  }
  func.func @transform_1(%arg0: i32) -> (i32, i32, i32) {
    %c0_i32 = arith.constant 0 : i32
    %c0_i32_0 = arith.constant 0 : i32
    %c0_i32_1 = arith.constant 0 : i32
    return %arg0, %c0_i32, %c0_i32_0 : i32, i32, i32
  }
  func.func @transform_2(%arg0: i32) -> (i32, i32) {
    %c0_i32 = arith.constant 0 : i32
    %c0_i32_0 = arith.constant 0 : i32
    return %arg0, %c0_i32 : i32, i32
  }
}

</mosaic_0001>

<bundles_post_ra>
// kernel: tpu_custom_call.1
= control target key start
LH: loop header
LB: loop body
LE: loop exit
PB: predicated region body
PF: predicated region fallthrough
CT: control target
= control target key end

     0   :  { %7 = vsyncpa [#allocation3], 0  ;;  %s228_s0 = inlined_call_operand.hbm [shape: f32[8,256], index: 0, kind: input, shape index: {}]   ;;  %s229_s1 = inlined_call_operand.hbm [shape: f32[64,1,128], index: 1, kind: input, shape index: {}]   ;;  %s230_s2 = inlined_call_operand.hbm [shape: f32[8,256], index: 2, kind: output, shape index: {}]  }
   0x1   :  { %8 = vsyncpa [#allocation6], 0 }
   0x2   :  { %9 = vsyncpa [#allocation4], 0  ;;  %s198_s9 = smov [#allocation2]   ;;  %s199_s11 = smov [#allocation5]  }
   0x3   :  { %s16_s10 = sshll.u32 %s198_s9, 4  ;;  %s25_s12 = sshll.u32 %s199_s11, 4  ;;  %s17_s10 = int_to_ptr.vmem [resolvable:$true] %s16_s10  ;;  %s26_s12 = int_to_ptr.vmem [resolvable:$true] %s25_s12 }
   0x4   :  { %s140_s13 = scalar_lea.vmem %s17_s10, 256  ;;  %p145_p1 = scmp.lt.s32.totalorder %s17_s10, %s17_s10 }
   0x5   :  { %p141_p0 = scmp.ne.s32.totalorder %s17_s10, %s140_s13  ;;  %p146_p2 = scmp.lt.s32.totalorder %s140_s13, %s140_s13 }
   0x7   :  { %p147_p3 = por %p146_p2, %p145_p1 }
   0x9   :  { %p148_p4 = pnand %p147_p3, %p141_p0 }
   0xb   :  { %151 = shalt.err (!%p148_p4)
}
   0xc   :  { %19 = dma.hbm_to_vmem [thread:$0]  %s228_s0, 256, %s17_s10, [#allocation3]  }
   0xd   :  { %s160_s16 = scalar_lea.vmem %s26_s12, 128  ;;  %p165_p6 = scmp.lt.s32.totalorder %s26_s12, %s26_s12 }
   0xe   :  { %p161_p5 = scmp.ne.s32.totalorder %s26_s12, %s160_s16  ;;  %p166_p7 = scmp.lt.s32.totalorder %s160_s16, %s160_s16 }
  0x10   :  { %p167_p8 = por %p166_p7, %p165_p6 }
  0x12   :  { %p168_p9 = pnand %p167_p8, %p161_p5 }
  0x14   :  { %171 = shalt.err (!%p168_p9)
}
  0x15   :  { %s200_s17 = smov 16   ;;  %s201_s18 = smov 1  }
  0x16   :  { %31 = dma.hbm_to_vmem [thread:$0]  %s229_s1, 128, %s26_s12, [#allocation6], %s200_s17, %s200_s17, %s201_s18  }
  0x17   :  { %192 = dma.done.wait [#allocation3], 256  }
  0x18   :  { %193 = vsyncadd [#allocation3], 4294967040 }
  0x19   :  { %194 = dma.done.wait [#allocation6], 128  }
  0x1a   :  { %195 = vsyncadd [#allocation6], 4294967168  ;;  %v61_v0 = vlaneseq  ;;  %v202_v1 = vmov 1966171168   ;;  %v38_v6 = vld [vmem:[#allocation5] sm:$0x1] }
  0x1b   :  { %v59_v2 = vunpack.c.l.s4 %v202_v1  ;;  %v39_v7 = vld [vmem:[#allocation5 + $0x1] sm:$0x1]  ;;  %v40_v8 = vld [vmem:[#allocation5 + $0x2] sm:$0x1]  ;;  %v41_v9 = vld [vmem:[#allocation5 + $0x3] sm:$0x1] }
  0x1c   :  { %v62_v3 = vshrl.u32 %v61_v0, 7  ;;  %v42_v10 = vld [vmem:[#allocation5 + $0x4] sm:$0x1]  ;;  %v43_v11 = vld [vmem:[#allocation5 + $0x5] sm:$0x1]  ;;  %v54_v12 = vcombine.low %v38_v6, %v39_v7  ;;  %v55_v15 = vcombine.low %v40_v8, %v41_v9  ;;  %v104_v26 = vld [vmem:[#allocation2] sm:$0xff] }
  0x1d   :  { %v60_v4 = vunpack.c.0.s8 %v59_v2  ;;  %v44_v13 = vld [vmem:[#allocation5 + $0x6] sm:$0x1]  ;;  %v45_v14 = vld [vmem:[#allocation5 + $0x7] sm:$0x1]  ;;  %v56_v16 = vcombine.low %v42_v10, %v43_v11  ;;  %v105_v27 = vld [vmem:[#allocation2 + $0x8] sm:$0xff]  ;;  %s203_s0 = smov [#allocation7]  }
  0x1e   :  { %v57_v17 = vcombine.low %v44_v13, %v45_v14  ;;  %s116_s1 = sshll.u32 %s203_s0, 4  ;;  %s117_s1 = int_to_ptr.vmem [resolvable:$true] %s116_s1 }
  0x1f   :  { %v63_v5 = vsub.s32 %v60_v4, %v62_v3  ;;  %s172_s21 = scalar_lea.vmem %s117_s1, 256  ;;  %p177_p11 = scmp.lt.s32.totalorder %s117_s1, %s117_s1 }
  0x20   :  { %p173_p10 = scmp.ne.s32.totalorder %s117_s1, %s172_s21  ;;  %p178_p12 = scmp.lt.s32.totalorder %s172_s21, %s172_s21 }
  0x21   :  { %v64_v18 = vrot.slane %v54_v12, %v63_v5  ;;  %v71_v19 = vrot.slane %v55_v15, %v63_v5  ;;  %v78_v20 = vrot.slane %v56_v16, %v63_v5  ;;  %v85_v21 = vrot.slane %v57_v17, %v63_v5 }
  0x22   :  { %p179_p13 = por %p178_p12, %p177_p11 }
  0x23   :  { %v86_v22 = vcombine.low %v64_v18, %v71_v19  ;;  %v87_v23 = vcombine.low %v78_v20, %v85_v21 }
  0x24   :  { %p180_p0 = pnand %p179_p13, %p173_p10 }
  0x25   :  { %v94_v24 = vrot.slane %v86_v22, %v63_v5  ;;  %v101_v25 = vrot.slane %v87_v23, %v63_v5 }
  0x27   :  { %v102_v28 = vcombine.low %v94_v24, %v101_v25 }
  0x29   :  { %v106_v29 = vadd.f32 %v104_v26, %v102_v28  ;;  %v107_v30 = vadd.f32 %v105_v27, %v102_v28 }
  0x2b   :  { %108 = vst [vmem:[#allocation7] sm:$0xff] %v106_v29  ;;  %109 = vst [vmem:[#allocation7 + $0x8] sm:$0xff] %v107_v30 }
  0x2c   :  { %183 = shalt.err (!%p180_p0)
}
  0x2d   :  { %119 = dma.vmem_to_hbm [thread:$0]  %s117_s1, 256, %s230_s2, [#allocation4]  }
  0x2e   :  { %196 = dma.done.wait [#allocation4], 256  }
  0x2f   :  { %197 = vsyncadd [#allocation4], 4294967040 }
  0x30   :  { %123 = vsyncpa [#allocation3], 1 }
  0x31   :  { %124 = vsyncpa [#allocation6], 1 }
  0x32   :  { %125 = vsyncpa [#allocation4], 1 }

</bundles_post_ra>
